<compile_context>
chip_gen: v7x
topology: tpu7x:2x2x1
jax: 0.10.0
libtpu: 0.0.40
codegen_flags: <defaults>
</compile_context>

<pallas_src>
import functools

import jax
import jax.numpy as jnp
import numpy as np
from jax.experimental import pallas as pl
from jax.experimental.pallas import tpu as pltpu


# ----------------------------------------------------------------------------- kernel

def fused_graphnet_kernel(nodes_ref, edges_ref, slab_ref, o_ref, state_ref, *,
                          offs, meta, embed_act, num_layer, tb, n):
    """One grid step = full forward pass for `tb` batch elements.

    nodes_ref: (tb*n, I)        flattened node features for this batch tile
    edges_ref: (E, tb, n, n)    edge planes, edge-type major
    slab_ref:  (R, Wmax)        all weights packed at static, 8-aligned row offsets
    o_ref:     (tb*n, O)        output slab
    state_ref: (tb*n, MAXW)     VMEM scratch holding the inter-layer state
    offs:  tuple of (row_off, rows, cols) per packed weight piece (static)
    meta:  tuple of (out_dim, M, H, is_last) per layer (static)
    """
    f32 = jnp.float32

    def piece(idx):
        r0, r, c = offs[idx]
        return slab_ref[pl.ds(r0, r), :][:, :c]

    # ---- embedding (SlimFC): one MXU matmul over all tb*n rows ----
    state = jnp.dot(nodes_ref[...], piece(0), preferred_element_type=f32) + piece(1)
    if embed_act == "tanh":
        state = jnp.tanh(state)
    elif embed_act == "relu":
        state = jnp.maximum(state, 0.0)

    edges = edges_ref[...]                                   # (E, tb, n, n)

    pi = 2
    for t in range(num_layer):
        out_dim, M, H, last = meta[t]
        wbig = piece(pi)          # (Din, M*out_dim + 2M)  [W_all | W@a1 | W@a2]
        bias = piece(pi + 1)      # (1, M*out_dim + 2M)    att biases folded in
        sb = piece(pi + 2)        # (M, out_dim)           state_bias per head
        pi += 3

        # one fused matmul for all heads over all tb*n rows
        y = jnp.dot(state, wbig, preferred_element_type=f32) + bias
        base = M * out_dim
        s1_all = y[:, base:base + M]                          # (tb*n, M)
        s2_all_t = jnp.transpose(y[:, base + M:base + 2 * M])  # (M, tb*n): ONE transpose / layer

        inv_m = 1.0 / M
        for b in range(tb):
            r0, r1 = b * n, (b + 1) * n
            acc = None
            for m in range(M):
                wh = y[r0:r1, m * out_dim:(m + 1) * out_dim]   # (n, out_dim)
                s1 = s1_all[r0:r1, m:m + 1]                    # (n, 1)
                s2 = s2_all_t[m:m + 1, r0:r1]                  # (1, n)

                # att[i, j] = s1[i] + s2[j]  (== att_1 + att_2.transpose(1, 2))
                att = s1 + s2                                  # (n, n)
                # leaky_relu(., 0.2) + edges[:, :, :, jj] with jj = m // H
                att = jnp.where(att > 0, att, 0.2 * att) + edges[m // H, b]
                # softmax over dim=1 of (B, N, N) -> axis 0 of this per-batch tile
                att = att - jnp.max(att, axis=0, keepdims=True)
                e = jnp.exp(att)
                att = e * pl.reciprocal(jnp.sum(e, axis=0, keepdims=True), approx=True)

                msg = jnp.dot(att, wh, preferred_element_type=f32) + sb[m:m + 1, :]
                if last:
                    # F.elu (clamp the dead branch so exp never overflows)
                    msg = jnp.where(msg > 0, msg, jnp.exp(jnp.minimum(msg, 0.0)) - 1.0)
                    acc = msg if acc is None else acc + msg
                else:
                    # head "concat": static-offset store into the state scratch
                    state_ref[r0:r1, m * out_dim:(m + 1) * out_dim] = msg
            if last:
                state_ref[r0:r1, 0:out_dim] = acc * inv_m      # mean over heads

        width = out_dim if last else M * out_dim
        state = state_ref[:, 0:width]

    # ---- output linear over all tb*n rows, one dense slab store ----
    out = jnp.dot(state, piece(pi), preferred_element_type=f32) + piece(pi + 1)
    o_ref[...] = out.astype(o_ref.dtype)


# ----------------------------------------------------------------------------- model

class MyGraphNetworkPallas:
    def __init__(self, num_inputs, num_outputs, model_config, num_edgetype=1, key=None):
        self.embed_dim = model_config["embed_size"]
        hiddens = model_config["hiddens"]
        dim_list = [self.embed_dim] + hiddens + [num_outputs]
        self.dim_list = dim_list
        self.num_layer = len(dim_list) - 2
        self.num_edgetype = num_edgetype
        self.num_heads = model_config.get("num_heads", [1] * self.num_layer)
        self.embed_act = model_config["embed_act"]
        self.output_level = model_config["output_level"]
        # TODO(synk): dropout is a training-only op; eval mode (dropout=0.0) -> no-op.

        # The original module computes layer in_dim with num_heads[tt] (not tt-1);
        # that is only consistent when all layers share the same head count.
        assert all(h == self.num_heads[0] for h in self.num_heads), \
            "MyGraphNetwork requires equal num_heads across layers"

        key = key if key is not None else jax.random.PRNGKey(0)

        def init(k, shape, scale=0.1):
            return (scale * jax.random.normal(k, shape)).astype(jnp.float32)

        keys = iter(jax.random.split(key, 1024))
        self.params = {
            "embed_w": init(next(keys), (num_inputs, self.embed_dim)),
            "embed_b": init(next(keys), (self.embed_dim,)),
            "out_w": init(next(keys), (dim_list[-2], dim_list[-1])),
            "out_b": init(next(keys), (dim_list[-1],)),
            "layers": [],
        }
        for tt in range(self.num_layer):
            in_dim = dim_list[tt] * (1 if tt == 0 else self.num_heads[tt] * self.num_edgetype)
            out_dim = dim_list[tt + 1]
            layer = []
            for _jj in range(self.num_edgetype):
                et = []
                for _ii in range(self.num_heads[tt]):
                    et.append({
                        "w": init(next(keys), (in_dim, out_dim)),        # filter (no bias)
                        "a1_w": init(next(keys), (out_dim, 1)),          # att_net_1
                        "a1_b": init(next(keys), (1,)),
                        "a2_w": init(next(keys), (out_dim, 1)),          # att_net_2
                        "a2_b": init(next(keys), (1,)),
                        "sb": jnp.zeros((out_dim,), jnp.float32),        # state_bias
                    })
                layer.append(et)
            self.params["layers"].append(layer)

        # ---- pack per-layer weights (fold att projections into one wide matmul) ----
        self.packed_layers = []
        for tt in range(self.num_layer):
            H = self.num_heads[tt]
            E = self.num_edgetype
            out_dim = dim_list[tt + 1]
            M = H * E
            w_cols, s1_cols, s2_cols, b1s, b2s, sbs = [], [], [], [], [], []
            for jj in range(E):          # same jj-outer / ii-inner order as the reference
                for ii in range(H):
                    hp = self.params["layers"][tt][jj][ii]
                    w_cols.append(hp["w"])
                    s1_cols.append(hp["w"] @ hp["a1_w"])     # fold att_net_1 projection
                    s2_cols.append(hp["w"] @ hp["a2_w"])     # fold att_net_2 projection
                    b1s.append(hp["a1_b"].reshape(1, 1))
                    b2s.append(hp["a2_b"].reshape(1, 1))
                    sbs.append(hp["sb"])
            wbig = jnp.concatenate(w_cols + s1_cols + s2_cols, axis=1)
            bias = jnp.concatenate(
                [jnp.zeros((1, M * out_dim), jnp.float32)] + b1s + b2s, axis=1)
            sb = jnp.stack(sbs, axis=0)                       # (M, out_dim)
            self.packed_layers.append({
                "wbig": wbig, "bias": bias, "sb": sb,
                "out_dim": out_dim, "M": M, "H": H,
                "last": tt == self.num_layer - 1,
            })

        # ---- pack ALL constant operands into ONE slab (single DMA, no tiny transfers) ----
        raw_pieces = [np.asarray(self.params["embed_w"], np.float32),
                      np.asarray(self.params["embed_b"], np.float32).reshape(1, -1)]
        for pk in self.packed_layers:
            raw_pieces += [np.asarray(pk["wbig"], np.float32),
                           np.asarray(pk["bias"], np.float32),
                           np.asarray(pk["sb"], np.float32)]
        raw_pieces += [np.asarray(self.params["out_w"], np.float32),
                       np.asarray(self.params["out_b"], np.float32).reshape(1, -1)]

        wmax = max(p.shape[1] for p in raw_pieces)
        padded, offs, row_off = [], [], 0
        for p in raw_pieces:
            r, c = p.shape
            rp = ((r + 7) // 8) * 8                           # 8-row aligned slices
            buf = np.zeros((rp, wmax), np.float32)
            buf[:r, :c] = p
            padded.append(buf)
            offs.append((int(row_off), int(r), int(c)))
            row_off += rp
        self.weight_slab = jnp.asarray(np.concatenate(padded, axis=0))
        self.piece_offs = tuple(offs)

        self.max_state_width = max(
            [(pk["out_dim"] if pk["last"] else pk["M"] * pk["out_dim"])
             for pk in self.packed_layers], default=self.embed_dim)

    # ---------------------------------------------------------------- fused forward
    def forward(self, nodes, edges, masks=None):
        """nodes: (B, N, I), edges: (B, N, N, E), masks: (B, N) -> (B, N, O) (node level)."""
        B, N, I = nodes.shape
        E = self.num_edgetype
        O = self.dim_list[-1]

        # ---- batch-tile sizing: >=256 rows per matmul when B allows; grid>=2 for v7x ----
        tb = max(1, min(B, 256 // max(N, 1)))
        if B >= 2:
            tb = min(tb, (B + 1) // 2)            # keep >=2 grid steps (v7x two TensorCores)
        if (tb * N) % 8 != 0 and tb != B:
            tb = B                                # fall back: single step, block == full array
        grid_b = -(-B // tb)
        B_pad = grid_b * tb

        # ---- edge layout: (B,N,N,E) -> (E,B,N,N); pure reshape (free) when E == 1 ----
        if E == 1:
            edges_t = edges.reshape(1, B, N, N)
        else:
            # TODO(synk): cache/keep the (E,B,N,N) layout upstream to avoid per-call transpose.
            edges_t = jnp.transpose(edges, (3, 0, 1, 2))

        nodes_p = nodes
        if B_pad > B:
            nodes_p = jnp.pad(nodes, ((0, B_pad - B), (0, 0), (0, 0)))
            edges_t = jnp.pad(edges_t, ((0, 0), (0, B_pad - B), (0, 0), (0, 0)))
        nodes_f = nodes_p.reshape(B_pad * N, I)

        meta = tuple((pk["out_dim"], pk["M"], pk["H"], pk["last"])
                     for pk in self.packed_layers)
        kernel = functools.partial(
            fused_graphnet_kernel, offs=self.piece_offs, meta=meta,
            embed_act=self.embed_act, num_layer=self.num_layer, tb=tb, n=N)

        # ---- cost estimate (kernel is tiny / overhead-bound; helps XLA scheduling) ----
        D0 = self.embed_dim
        flops = 2 * B_pad * N * I * D0
        trans = B_pad * N * D0
        din = D0
        for pk in self.packed_layers:
            od, M = pk["out_dim"], pk["M"]
            width = M * od + 2 * M
            flops += 2 * B_pad * N * din * width
            flops += 2 * B_pad * M * N * N * od + 8 * B_pad * M * N * N
            trans += B_pad * M * N * N
            if pk["last"]:
                trans += B_pad * M * N * od
            din = od if pk["last"] else M * od
        flops += 2 * B_pad * N * din * O
        bytes_acc = 4 * (B_pad * N * I + E * B_pad * N * N
                         + int(self.weight_slab.size) + B_pad * N * O)

        out_flat = pl.pallas_call(
            kernel,
            out_shape=jax.ShapeDtypeStruct((B_pad * N, O), jnp.float32),
            grid=(grid_b,),
            in_specs=[
                pl.BlockSpec((tb * N, I), lambda b: (b, 0)),
                pl.BlockSpec((E, tb, N, N), lambda b: (0, b, 0, 0)),
                pl.BlockSpec(self.weight_slab.shape, lambda b: (0, 0)),  # constant block: fetched once
            ],
            out_specs=pl.BlockSpec((tb * N, O), lambda b: (b, 0)),
            scratch_shapes=[pltpu.VMEM((tb * N, self.max_state_width), jnp.float32)],
            compiler_params=pltpu.CompilerParams(
                dimension_semantics=("parallel",)),   # megacore-shard batch tiles (v7x)
            cost_estimate=pl.CostEstimate(
                flops=int(flops), transcendentals=int(trans), bytes_accessed=int(bytes_acc)),
        )(nodes_f, edges_t, self.weight_slab)

        out = out_flat.reshape(B_pad, N, O)[:B]

        if self.output_level == "graph":
            if masks is not None:
                out = jnp.squeeze(out) * masks
            out = jnp.mean(out, axis=1)
        return out

    # ---------------------------------------------------------------- pure-JAX reference
    def reference(self, nodes, edges, masks=None):
        p = self.params
        state = nodes @ p["embed_w"] + p["embed_b"]
        state = jnp.tanh(state) if self.embed_act == "tanh" else jnp.maximum(state, 0.0)
        for tt in range(self.num_layer):
            last = tt == self.num_layer - 1
            h = []
            for jj in range(self.num_edgetype):
                for ii in range(self.num_heads[tt]):
                    hp = p["layers"][tt][jj][ii]
                    Wh = state @ hp["w"]
                    s1 = Wh @ hp["a1_w"] + hp["a1_b"]
                    s2 = Wh @ hp["a2_w"] + hp["a2_b"]
                    att = s1 + jnp.swapaxes(s2, 1, 2)
                    att = jax.nn.leaky_relu(att, 0.2) + edges[:, :, :, jj]
                    att = jax.nn.softmax(att, axis=1)
                    msg = jnp.einsum("bij,bjd->bid", att, Wh) + hp["sb"]
                    if last:
                        msg = jax.nn.elu(msg)
                    h.append(msg)
            state = jnp.mean(jnp.stack(h, 0), 0) if last else jnp.concatenate(h, axis=2)
        out = state @ p["out_w"] + p["out_b"]
        if self.output_level == "graph":
            if masks is not None:
                out = jnp.squeeze(out) * masks
            out = jnp.mean(out, axis=1)
        return out


# ----------------------------------------------------------------------------- main

if __name__ == "__main__":
    B, N, I, O, E = 2, 8, 6, 4, 1
    model_config = {
        "embed_size": 8,
        "embed_act": "tanh",
        "hiddens": [16, 16],
        "num_heads": [2, 2],   # equal heads -> original module's filter-dim indexing is consistent
        "dropout": 0.0,
        "output_level": "node",
    }

    key = jax.random.PRNGKey(0)
    k_nodes, k_edges, k_params = jax.random.split(key, 3)
    nodes = jax.random.normal(k_nodes, (B, N, I), jnp.float32)
    edges = jax.random.normal(k_edges, (B, N, N, E), jnp.float32)

    net = MyGraphNetworkPallas(I, O, model_config, num_edgetype=E, key=k_params)

    out = net.forward(nodes, edges)
    out = jax.block_until_ready(out)

    ref = jax.block_until_ready(net.reference(nodes, edges))
    assert out.shape == (B, N, O)
    # tolerance covers (a) the intentional f32 reassociation from folding W@a1 / W@a2
    # into the fused matmul and (b) the EUP approximate reciprocal in the softmax.
    assert np.allclose(np.asarray(out), np.asarray(ref), atol=2e-3, rtol=2e-3)

    print("KERNEL_OK")
</pallas_src>

<mosaic_0001>
module attributes {stable_mosaic.version = 11 : i64} {
  func.func @fused_graphnet_kernel(%arg0: i32, %arg1: memref<8x6xf32, #tpu.memory_space<vmem>>, %arg2: memref<1x1x8x8xf32, #tpu.memory_space<vmem>>, %arg3: memref<112x36xf32, #tpu.memory_space<vmem>>, %arg4: memref<8x4xf32, #tpu.memory_space<vmem>>, %arg5: memref<8x32xf32, #tpu.memory_space<vmem>>) attributes {dimension_semantics = [#tpu.dimension_semantics<parallel>], iteration_bounds = array<i64: 2>, scalar_prefetch = 0 : i64, scratch_operands = 1 : i64, tpu.core_type = #tpu.core_type<tc>, window_params = [{transform_indices = @transform_0, window_bounds = array<i64: 8, 6>}, {transform_indices = @transform_1, window_bounds = array<i64: 1, 1, 8, 8>}, {pipeline_mode = #tpu.pipeline_mode<synchronous>, transform_indices = @transform_2, window_bounds = array<i64: 112, 36>}, {transform_indices = @transform_3, window_bounds = array<i64: 8, 4>}]} {
    %c0 = arith.constant 0 : index
    %c0_0 = arith.constant 0 : index
    %0 = vector.load %arg1[%c0, %c0_0] : memref<8x6xf32, #tpu.memory_space<vmem>>, vector<8x6xf32>
    %c0_1 = arith.constant 0 : index
    %c0_2 = arith.constant 0 : index
    %1 = vector.load %arg3[%c0_1, %c0_2] : memref<112x36xf32, #tpu.memory_space<vmem>>, vector<6x36xf32>
    %2 = vector.extract_strided_slice %1 {offsets = [0, 0], sizes = [6, 8], strides = [1, 1]} : vector<6x36xf32> to vector<6x8xf32>
    %cst = arith.constant dense<0.000000e+00> : vector<8x8xf32>
    %3 = tpu.matmul %0, %2, %cst {dimension_numbers = #tpu.dot_dimension_numbers<[1], [0], [0], [1], [0, 0, 1, 1], [], []>} : vector<8x6xf32>, vector<6x8xf32>, vector<8x8xf32> -> vector<8x8xf32>
    %c8 = arith.constant 8 : index
    %c0_3 = arith.constant 0 : index
    %4 = vector.load %arg3[%c8, %c0_3] : memref<112x36xf32, #tpu.memory_space<vmem>>, vector<1x36xf32>
    %5 = vector.extract_strided_slice %4 {offsets = [0, 0], sizes = [1, 8], strides = [1, 1]} : vector<1x36xf32> to vector<1x8xf32>
    %6 = vector.broadcast %5 : vector<1x8xf32> to vector<8x8xf32>
    %7 = arith.addf %3, %6 : vector<8x8xf32>
    %8 = math.tanh %7 : vector<8x8xf32>
    %c0_4 = arith.constant 0 : index
    %c0_5 = arith.constant 0 : index
    %c0_6 = arith.constant 0 : index
    %c0_7 = arith.constant 0 : index
    %9 = vector.load %arg2[%c0_4, %c0_5, %c0_6, %c0_7] : memref<1x1x8x8xf32, #tpu.memory_space<vmem>>, vector<1x1x8x8xf32>
    %c16 = arith.constant 16 : index
    %c0_8 = arith.constant 0 : index
    %10 = vector.load %arg3[%c16, %c0_8] : memref<112x36xf32, #tpu.memory_space<vmem>>, vector<8x36xf32>
    %c24 = arith.constant 24 : index
    %c0_9 = arith.constant 0 : index
    %11 = vector.load %arg3[%c24, %c0_9] : memref<112x36xf32, #tpu.memory_space<vmem>>, vector<1x36xf32>
    %c32 = arith.constant 32 : index
    %c0_10 = arith.constant 0 : index
    %12 = vector.load %arg3[%c32, %c0_10] : memref<112x36xf32, #tpu.memory_space<vmem>>, vector<2x36xf32>
    %13 = vector.extract_strided_slice %12 {offsets = [0, 0], sizes = [2, 16], strides = [1, 1]} : vector<2x36xf32> to vector<2x16xf32>
    %cst_11 = arith.constant dense<0.000000e+00> : vector<8x36xf32>
    %14 = tpu.matmul %8, %10, %cst_11 {dimension_numbers = #tpu.dot_dimension_numbers<[1], [0], [0], [1], [0, 0, 1, 1], [], []>} : vector<8x8xf32>, vector<8x36xf32>, vector<8x36xf32> -> vector<8x36xf32>
    %15 = vector.broadcast %11 : vector<1x36xf32> to vector<8x36xf32>
    %16 = arith.addf %14, %15 : vector<8x36xf32>
    %17 = vector.extract_strided_slice %16 {offsets = [0, 32], sizes = [8, 2], strides = [1, 1]} : vector<8x36xf32> to vector<8x2xf32>
    %18 = vector.extract_strided_slice %16 {offsets = [0, 34], sizes = [8, 2], strides = [1, 1]} : vector<8x36xf32> to vector<8x2xf32>
    %19 = tpu.transpose %18, [1, 0] : vector<8x2xf32> -> vector<2x8xf32>
    %20 = vector.extract_strided_slice %16 {offsets = [0, 0], sizes = [8, 16], strides = [1, 1]} : vector<8x36xf32> to vector<8x16xf32>
    %21 = vector.extract_strided_slice %17 {offsets = [0, 0], sizes = [8, 1], strides = [1, 1]} : vector<8x2xf32> to vector<8x1xf32>
    %22 = vector.extract_strided_slice %19 {offsets = [0, 0], sizes = [1, 8], strides = [1, 1]} : vector<2x8xf32> to vector<1x8xf32>
    %23 = vector.broadcast %21 : vector<8x1xf32> to vector<8x8xf32>
    %24 = vector.broadcast %22 : vector<1x8xf32> to vector<8x8xf32>
    %25 = arith.addf %23, %24 : vector<8x8xf32>
    %cst_12 = arith.constant 0.000000e+00 : f32
    %26 = vector.broadcast %cst_12 : f32 to vector<8x8xf32>
    %27 = arith.cmpf ogt, %25, %26 : vector<8x8xf32>
    %cst_13 = arith.constant 2.000000e-01 : f32
    %28 = vector.broadcast %cst_13 : f32 to vector<8x8xf32>
    %29 = arith.mulf %28, %25 : vector<8x8xf32>
    %30 = arith.select %27, %25, %29 : vector<8x8xi1>, vector<8x8xf32>
    %31 = vector.shape_cast %9 : vector<1x1x8x8xf32> to vector<8x8xf32>
    %32 = arith.addf %30, %31 : vector<8x8xf32>
    %cst_14 = arith.constant dense<0xFF800000> : vector<8xf32>
    %33 = vector.multi_reduction <maximumf>, %32, %cst_14 [0] : vector<8x8xf32> to vector<8xf32>
    %34 = vector.shape_cast %33 : vector<8xf32> to vector<1x8xf32>
    %35 = vector.broadcast %34 : vector<1x8xf32> to vector<8x8xf32>
    %36 = arith.subf %32, %35 : vector<8x8xf32>
    %37 = math.exp %36 : vector<8x8xf32>
    %cst_15 = arith.constant dense<0.000000e+00> : vector<8xf32>
    %38 = vector.multi_reduction <add>, %37, %cst_15 [0] : vector<8x8xf32> to vector<8xf32>
    %39 = vector.shape_cast %38 : vector<8xf32> to vector<1x8xf32>
    %40 = tpu.reciprocal %39 {approx = true} : vector<1x8xf32> -> vector<1x8xf32>
    %41 = vector.broadcast %40 : vector<1x8xf32> to vector<8x8xf32>
    %42 = arith.mulf %37, %41 : vector<8x8xf32>
    %cst_16 = arith.constant dense<0.000000e+00> : vector<8x16xf32>
    %43 = tpu.matmul %42, %20, %cst_16 {dimension_numbers = #tpu.dot_dimension_numbers<[1], [0], [0], [1], [0, 0, 1, 1], [], []>} : vector<8x8xf32>, vector<8x16xf32>, vector<8x16xf32> -> vector<8x16xf32>
    %44 = vector.extract_strided_slice %13 {offsets = [0, 0], sizes = [1, 16], strides = [1, 1]} : vector<2x16xf32> to vector<1x16xf32>
    %45 = vector.broadcast %44 : vector<1x16xf32> to vector<8x16xf32>
    %46 = arith.addf %43, %45 : vector<8x16xf32>
    %c0_17 = arith.constant 0 : index
    %c0_18 = arith.constant 0 : index
    %47 = vector.load %arg5[%c0_17, %c0_18] : memref<8x32xf32, #tpu.memory_space<vmem>>, vector<8x16xf32>
    tpu.vector_store %arg5[%c0_17, %c0_18], %46 {strides = array<i32>} : memref<8x32xf32, #tpu.memory_space<vmem>>, vector<8x16xf32>,
    %48 = vector.extract_strided_slice %16 {offsets = [0, 16], sizes = [8, 16], strides = [1, 1]} : vector<8x36xf32> to vector<8x16xf32>
    %49 = vector.extract_strided_slice %17 {offsets = [0, 1], sizes = [8, 1], strides = [1, 1]} : vector<8x2xf32> to vector<8x1xf32>
    %50 = vector.extract_strided_slice %19 {offsets = [1, 0], sizes = [1, 8], strides = [1, 1]} : vector<2x8xf32> to vector<1x8xf32>
    %51 = vector.broadcast %49 : vector<8x1xf32> to vector<8x8xf32>
    %52 = vector.broadcast %50 : vector<1x8xf32> to vector<8x8xf32>
    %53 = arith.addf %51, %52 : vector<8x8xf32>
    %cst_19 = arith.constant 0.000000e+00 : f32
    %54 = vector.broadcast %cst_19 : f32 to vector<8x8xf32>
    %55 = arith.cmpf ogt, %53, %54 : vector<8x8xf32>
    %cst_20 = arith.constant 2.000000e-01 : f32
    %56 = vector.broadcast %cst_20 : f32 to vector<8x8xf32>
    %57 = arith.mulf %56, %53 : vector<8x8xf32>
    %58 = arith.select %55, %53, %57 : vector<8x8xi1>, vector<8x8xf32>
    %59 = vector.shape_cast %9 : vector<1x1x8x8xf32> to vector<8x8xf32>
    %60 = arith.addf %58, %59 : vector<8x8xf32>
    %cst_21 = arith.constant dense<0xFF800000> : vector<8xf32>
    %61 = vector.multi_reduction <maximumf>, %60, %cst_21 [0] : vector<8x8xf32> to vector<8xf32>
    %62 = vector.shape_cast %61 : vector<8xf32> to vector<1x8xf32>
    %63 = vector.broadcast %62 : vector<1x8xf32> to vector<8x8xf32>
    %64 = arith.subf %60, %63 : vector<8x8xf32>
    %65 = math.exp %64 : vector<8x8xf32>
    %cst_22 = arith.constant dense<0.000000e+00> : vector<8xf32>
    %66 = vector.multi_reduction <add>, %65, %cst_22 [0] : vector<8x8xf32> to vector<8xf32>
    %67 = vector.shape_cast %66 : vector<8xf32> to vector<1x8xf32>
    %68 = tpu.reciprocal %67 {approx = true} : vector<1x8xf32> -> vector<1x8xf32>
    %69 = vector.broadcast %68 : vector<1x8xf32> to vector<8x8xf32>
    %70 = arith.mulf %65, %69 : vector<8x8xf32>
    %cst_23 = arith.constant dense<0.000000e+00> : vector<8x16xf32>
    %71 = tpu.matmul %70, %48, %cst_23 {dimension_numbers = #tpu.dot_dimension_numbers<[1], [0], [0], [1], [0, 0, 1, 1], [], []>} : vector<8x8xf32>, vector<8x16xf32>, vector<8x16xf32> -> vector<8x16xf32>
    %72 = vector.extract_strided_slice %13 {offsets = [1, 0], sizes = [1, 16], strides = [1, 1]} : vector<2x16xf32> to vector<1x16xf32>
    %73 = vector.broadcast %72 : vector<1x16xf32> to vector<8x16xf32>
    %74 = arith.addf %71, %73 : vector<8x16xf32>
    %c0_24 = arith.constant 0 : index
    %c16_25 = arith.constant 16 : index
    %75 = vector.load %arg5[%c0_24, %c16_25] : memref<8x32xf32, #tpu.memory_space<vmem>>, vector<8x16xf32>
    tpu.vector_store %arg5[%c0_24, %c16_25], %74 {strides = array<i32>} : memref<8x32xf32, #tpu.memory_space<vmem>>, vector<8x16xf32>,
    %c0_26 = arith.constant 0 : index
    %c0_27 = arith.constant 0 : index
    %76 = vector.load %arg5[%c0_26, %c0_27] : memref<8x32xf32, #tpu.memory_space<vmem>>, vector<8x32xf32>
    %c40 = arith.constant 40 : index
    %c0_28 = arith.constant 0 : index
    %77 = vector.load %arg3[%c40, %c0_28] : memref<112x36xf32, #tpu.memory_space<vmem>>, vector<32x36xf32>
    %c72 = arith.constant 72 : index
    %c0_29 = arith.constant 0 : index
    %78 = vector.load %arg3[%c72, %c0_29] : memref<112x36xf32, #tpu.memory_space<vmem>>, vector<1x36xf32>
    %c80 = arith.constant 80 : index
    %c0_30 = arith.constant 0 : index
    %79 = vector.load %arg3[%c80, %c0_30] : memref<112x36xf32, #tpu.memory_space<vmem>>, vector<2x36xf32>
    %80 = vector.extract_strided_slice %79 {offsets = [0, 0], sizes = [2, 16], strides = [1, 1]} : vector<2x36xf32> to vector<2x16xf32>
    %cst_31 = arith.constant dense<0.000000e+00> : vector<8x36xf32>
    %81 = tpu.matmul %76, %77, %cst_31 {dimension_numbers = #tpu.dot_dimension_numbers<[1], [0], [0], [1], [0, 0, 1, 1], [], []>} : vector<8x32xf32>, vector<32x36xf32>, vector<8x36xf32> -> vector<8x36xf32>
    %82 = vector.broadcast %78 : vector<1x36xf32> to vector<8x36xf32>
    %83 = arith.addf %81, %82 : vector<8x36xf32>
    %84 = vector.extract_strided_slice %83 {offsets = [0, 32], sizes = [8, 2], strides = [1, 1]} : vector<8x36xf32> to vector<8x2xf32>
    %85 = vector.extract_strided_slice %83 {offsets = [0, 34], sizes = [8, 2], strides = [1, 1]} : vector<8x36xf32> to vector<8x2xf32>
    %86 = tpu.transpose %85, [1, 0] : vector<8x2xf32> -> vector<2x8xf32>
    %87 = vector.extract_strided_slice %83 {offsets = [0, 0], sizes = [8, 16], strides = [1, 1]} : vector<8x36xf32> to vector<8x16xf32>
    %88 = vector.extract_strided_slice %84 {offsets = [0, 0], sizes = [8, 1], strides = [1, 1]} : vector<8x2xf32> to vector<8x1xf32>
    %89 = vector.extract_strided_slice %86 {offsets = [0, 0], sizes = [1, 8], strides = [1, 1]} : vector<2x8xf32> to vector<1x8xf32>
    %90 = vector.broadcast %88 : vector<8x1xf32> to vector<8x8xf32>
    %91 = vector.broadcast %89 : vector<1x8xf32> to vector<8x8xf32>
    %92 = arith.addf %90, %91 : vector<8x8xf32>
    %cst_32 = arith.constant 0.000000e+00 : f32
    %93 = vector.broadcast %cst_32 : f32 to vector<8x8xf32>
    %94 = arith.cmpf ogt, %92, %93 : vector<8x8xf32>
    %cst_33 = arith.constant 2.000000e-01 : f32
    %95 = vector.broadcast %cst_33 : f32 to vector<8x8xf32>
    %96 = arith.mulf %95, %92 : vector<8x8xf32>
    %97 = arith.select %94, %92, %96 : vector<8x8xi1>, vector<8x8xf32>
    %98 = vector.shape_cast %9 : vector<1x1x8x8xf32> to vector<8x8xf32>
    %99 = arith.addf %97, %98 : vector<8x8xf32>
    %cst_34 = arith.constant dense<0xFF800000> : vector<8xf32>
    %100 = vector.multi_reduction <maximumf>, %99, %cst_34 [0] : vector<8x8xf32> to vector<8xf32>
    %101 = vector.shape_cast %100 : vector<8xf32> to vector<1x8xf32>
    %102 = vector.broadcast %101 : vector<1x8xf32> to vector<8x8xf32>
    %103 = arith.subf %99, %102 : vector<8x8xf32>
    %104 = math.exp %103 : vector<8x8xf32>
    %cst_35 = arith.constant dense<0.000000e+00> : vector<8xf32>
    %105 = vector.multi_reduction <add>, %104, %cst_35 [0] : vector<8x8xf32> to vector<8xf32>
    %106 = vector.shape_cast %105 : vector<8xf32> to vector<1x8xf32>
    %107 = tpu.reciprocal %106 {approx = true} : vector<1x8xf32> -> vector<1x8xf32>
    %108 = vector.broadcast %107 : vector<1x8xf32> to vector<8x8xf32>
    %109 = arith.mulf %104, %108 : vector<8x8xf32>
    %cst_36 = arith.constant dense<0.000000e+00> : vector<8x16xf32>
    %110 = tpu.matmul %109, %87, %cst_36 {dimension_numbers = #tpu.dot_dimension_numbers<[1], [0], [0], [1], [0, 0, 1, 1], [], []>} : vector<8x8xf32>, vector<8x16xf32>, vector<8x16xf32> -> vector<8x16xf32>
    %111 = vector.extract_strided_slice %80 {offsets = [0, 0], sizes = [1, 16], strides = [1, 1]} : vector<2x16xf32> to vector<1x16xf32>
    %112 = vector.broadcast %111 : vector<1x16xf32> to vector<8x16xf32>
    %113 = arith.addf %110, %112 : vector<8x16xf32>
    %cst_37 = arith.constant 0.000000e+00 : f32
    %114 = vector.broadcast %cst_37 : f32 to vector<8x16xf32>
    %115 = arith.cmpf ogt, %113, %114 : vector<8x16xf32>
    %cst_38 = arith.constant 0.000000e+00 : f32
    %116 = vector.broadcast %cst_38 : f32 to vector<8x16xf32>
    %117 = arith.minimumf %113, %116 : vector<8x16xf32>
    %118 = math.exp %117 : vector<8x16xf32>
    %cst_39 = arith.constant 1.000000e+00 : f32
    %119 = vector.broadcast %cst_39 : f32 to vector<8x16xf32>
    %120 = arith.subf %118, %119 : vector<8x16xf32>
    %121 = arith.select %115, %113, %120 : vector<8x16xi1>, vector<8x16xf32>
    %122 = vector.extract_strided_slice %83 {offsets = [0, 16], sizes = [8, 16], strides = [1, 1]} : vector<8x36xf32> to vector<8x16xf32>
    %123 = vector.extract_strided_slice %84 {offsets = [0, 1], sizes = [8, 1], strides = [1, 1]} : vector<8x2xf32> to vector<8x1xf32>
    %124 = vector.extract_strided_slice %86 {offsets = [1, 0], sizes = [1, 8], strides = [1, 1]} : vector<2x8xf32> to vector<1x8xf32>
    %125 = vector.broadcast %123 : vector<8x1xf32> to vector<8x8xf32>
    %126 = vector.broadcast %124 : vector<1x8xf32> to vector<8x8xf32>
    %127 = arith.addf %125, %126 : vector<8x8xf32>
    %cst_40 = arith.constant 0.000000e+00 : f32
    %128 = vector.broadcast %cst_40 : f32 to vector<8x8xf32>
    %129 = arith.cmpf ogt, %127, %128 : vector<8x8xf32>
    %cst_41 = arith.constant 2.000000e-01 : f32
    %130 = vector.broadcast %cst_41 : f32 to vector<8x8xf32>
    %131 = arith.mulf %130, %127 : vector<8x8xf32>
    %132 = arith.select %129, %127, %131 : vector<8x8xi1>, vector<8x8xf32>
    %133 = vector.shape_cast %9 : vector<1x1x8x8xf32> to vector<8x8xf32>
    %134 = arith.addf %132, %133 : vector<8x8xf32>
    %cst_42 = arith.constant dense<0xFF800000> : vector<8xf32>
    %135 = vector.multi_reduction <maximumf>, %134, %cst_42 [0] : vector<8x8xf32> to vector<8xf32>
    %136 = vector.shape_cast %135 : vector<8xf32> to vector<1x8xf32>
    %137 = vector.broadcast %136 : vector<1x8xf32> to vector<8x8xf32>
    %138 = arith.subf %134, %137 : vector<8x8xf32>
    %139 = math.exp %138 : vector<8x8xf32>
    %cst_43 = arith.constant dense<0.000000e+00> : vector<8xf32>
    %140 = vector.multi_reduction <add>, %139, %cst_43 [0] : vector<8x8xf32> to vector<8xf32>
    %141 = vector.shape_cast %140 : vector<8xf32> to vector<1x8xf32>
    %142 = tpu.reciprocal %141 {approx = true} : vector<1x8xf32> -> vector<1x8xf32>
    %143 = vector.broadcast %142 : vector<1x8xf32> to vector<8x8xf32>
    %144 = arith.mulf %139, %143 : vector<8x8xf32>
    %cst_44 = arith.constant dense<0.000000e+00> : vector<8x16xf32>
    %145 = tpu.matmul %144, %122, %cst_44 {dimension_numbers = #tpu.dot_dimension_numbers<[1], [0], [0], [1], [0, 0, 1, 1], [], []>} : vector<8x8xf32>, vector<8x16xf32>, vector<8x16xf32> -> vector<8x16xf32>
    %146 = vector.extract_strided_slice %80 {offsets = [1, 0], sizes = [1, 16], strides = [1, 1]} : vector<2x16xf32> to vector<1x16xf32>
    %147 = vector.broadcast %146 : vector<1x16xf32> to vector<8x16xf32>
    %148 = arith.addf %145, %147 : vector<8x16xf32>
    %cst_45 = arith.constant 0.000000e+00 : f32
    %149 = vector.broadcast %cst_45 : f32 to vector<8x16xf32>
    %150 = arith.cmpf ogt, %148, %149 : vector<8x16xf32>
    %cst_46 = arith.constant 0.000000e+00 : f32
    %151 = vector.broadcast %cst_46 : f32 to vector<8x16xf32>
    %152 = arith.minimumf %148, %151 : vector<8x16xf32>
    %153 = math.exp %152 : vector<8x16xf32>
    %cst_47 = arith.constant 1.000000e+00 : f32
    %154 = vector.broadcast %cst_47 : f32 to vector<8x16xf32>
    %155 = arith.subf %153, %154 : vector<8x16xf32>
    %156 = arith.select %150, %148, %155 : vector<8x16xi1>, vector<8x16xf32>
    %157 = arith.addf %121, %156 : vector<8x16xf32>
    %cst_48 = arith.constant 5.000000e-01 : f32
    %158 = vector.broadcast %cst_48 : f32 to vector<8x16xf32>
    %159 = arith.mulf %157, %158 : vector<8x16xf32>
    %c0_49 = arith.constant 0 : index
    %c0_50 = arith.constant 0 : index
    %160 = vector.load %arg5[%c0_49, %c0_50] : memref<8x32xf32, #tpu.memory_space<vmem>>, vector<8x16xf32>
    tpu.vector_store %arg5[%c0_49, %c0_50], %159 {strides = array<i32>} : memref<8x32xf32, #tpu.memory_space<vmem>>, vector<8x16xf32>,
    %c0_51 = arith.constant 0 : index
    %c0_52 = arith.constant 0 : index
    %161 = vector.load %arg5[%c0_51, %c0_52] : memref<8x32xf32, #tpu.memory_space<vmem>>, vector<8x16xf32>
    %c88 = arith.constant 88 : index
    %c0_53 = arith.constant 0 : index
    %162 = vector.load %arg3[%c88, %c0_53] : memref<112x36xf32, #tpu.memory_space<vmem>>, vector<16x36xf32>
    %163 = vector.extract_strided_slice %162 {offsets = [0, 0], sizes = [16, 4], strides = [1, 1]} : vector<16x36xf32> to vector<16x4xf32>
    %cst_54 = arith.constant dense<0.000000e+00> : vector<8x4xf32>
    %164 = tpu.matmul %161, %163, %cst_54 {dimension_numbers = #tpu.dot_dimension_numbers<[1], [0], [0], [1], [0, 0, 1, 1], [], []>} : vector<8x16xf32>, vector<16x4xf32>, vector<8x4xf32> -> vector<8x4xf32>
    %c104 = arith.constant 104 : index
    %c0_55 = arith.constant 0 : index
    %165 = vector.load %arg3[%c104, %c0_55] : memref<112x36xf32, #tpu.memory_space<vmem>>, vector<1x36xf32>
    %166 = vector.extract_strided_slice %165 {offsets = [0, 0], sizes = [1, 4], strides = [1, 1]} : vector<1x36xf32> to vector<1x4xf32>
    %167 = vector.broadcast %166 : vector<1x4xf32> to vector<8x4xf32>
    %168 = arith.addf %164, %167 : vector<8x4xf32>
    %c0_56 = arith.constant 0 : index
    %c0_57 = arith.constant 0 : index
    %169 = vector.load %arg4[%c0_56, %c0_57] : memref<8x4xf32, #tpu.memory_space<vmem>>, vector<8x4xf32>
    tpu.vector_store %arg4[%c0_56, %c0_57], %168 {strides = array<i32>} : memref<8x4xf32, #tpu.memory_space<vmem>>, vector<8x4xf32>,
    return
  }
  func.func @transform_0(%arg0: i32) -> (i32, i32) {
    %c0_i32 = arith.constant 0 : i32
    %c0_i32_0 = arith.constant 0 : i32
    return %arg0, %c0_i32 : i32, i32
  }
  func.func @transform_1(%arg0: i32) -> (i32, i32, i32, i32) {
    %c0_i32 = arith.constant 0 : i32
    %c0_i32_0 = arith.constant 0 : i32
    %c0_i32_1 = arith.constant 0 : i32
    %c0_i32_2 = arith.constant 0 : i32
    return %c0_i32, %arg0, %c0_i32_0, %c0_i32_1 : i32, i32, i32, i32
  }
  func.func @transform_2(%arg0: i32) -> (i32, i32) {
    %c0_i32 = arith.constant 0 : i32
    %c0_i32_0 = arith.constant 0 : i32
    %c0_i32_1 = arith.constant 0 : i32
    return %c0_i32, %c0_i32_0 : i32, i32
  }
  func.func @transform_3(%arg0: i32) -> (i32, i32) {
    %c0_i32 = arith.constant 0 : i32
    %c0_i32_0 = arith.constant 0 : i32
    return %arg0, %c0_i32 : i32, i32
  }
}

</mosaic_0001>

<bundles_post_ra>
// kernel: tpu_custom_call.1
= control target key start
LH: loop header
LB: loop body
LE: loop exit
PB: predicated region body
PF: predicated region fallthrough
CT: control target
= control target key end

     0   :  { %s1301_s12 = smov 0   ;;  %s1430_s0 = inlined_call_operand.vmem [shape: f32[16,6], index: 0, kind: input, shape index: {}]   ;;  %s1431_s1 = inlined_call_operand.vmem [shape: f32[1,2,8,8], index: 1, kind: input, shape index: {}]   ;;  %s1432_s2 = inlined_call_operand.vmem [shape: f32[112,36], index: 2, kind: input, shape index: {}]   ;;  %s1433_s3 = inlined_call_operand.vmem [shape: f32[16,4], index: 3, kind: output, shape index: {}]  }
   0x1 LB: > { %s1121_s13 = sadd.s32 4294967295, %s1271_s12   ;;  %p1125_p0 = scmp.ge.s32.totalorder %s1271_s12, 1  ;;  %s1271_s12 = sphi %s1301_s12, %s13_s12  }
   0x2   : > { %p145_p1 = scmp.lt.s32.totalorder %s1271_s12, 3 }
   0x4   : > { %p146_p2 = pnand %p1125_p0, %p145_p1 }
   0x5   : > { %v184_v0 = vld [vmem:[%s1432_s2] sm:$0x3f] (!%p146_p2)  ;;  %vm194_vm0 = vcmask (!%p146_p2), 1045504   ;;  %p171_p3 = scmp.lt.s32.totalorder (!%p146_p2), %s1121_s13, 1  ;;  %v1273_v1 = vmov (!%p146_p2), 0.0   ;;  %vm1274_vm1 = vmmov (!%p146_p2), 0   ;;  %v391_v18 = vlaneseq (!%p146_p2) }
   0x6   : > { %149 = sbr.rel (%p146_p2) target bundleno = 2084 (0x824), region = 32  ;;  %1166 = vmatprep.subr.mxu0 (!%p146_p2), %v1273_v1  ;;  %1168 = vmatprep.mubr.msk.f32.mxu0 (!%p146_p2), %vm1274_vm1, %v1273_v1  ;;  %vm190_vm2 = vcmask (!%p146_p2), 48128   ;;  %v270_v3 = vld [vmem:[%s1432_s2 + $0x10] sm:$0xff] (!%p146_p2)  ;;  %v1129_v4 = vld [vmem:[%s1432_s2 + $0x8] ss:$0 sm:$0xff] (!%p146_p2)  ;;  %vm277_vm3 = vcmask (!%p146_p2), 64512  }
   0x7   : > { %1167 = vmatpush3.msk.msra.mxu0 (!%p146_p2), %vm194_vm0, %v184_v0  ;;  %1171 = vmatprep.subr.mxu1 (!%p146_p2), %v1273_v1  ;;  %v1275_v9 = vmov (!%p146_p2), 33   ;;  %v1132_v10 = vld [vmem:[%s1432_s2 + $0x18] ss:$0 sm:$0xff] (!%p146_p2)  ;;  %s1276_s26 = smov (!%p146_p2), 94   ;;  %s1277_s27 = smov (!%p146_p2), 112   ;;  %v1278_v14 = vmov (!%p146_p2), 32  }
   0x8   : > { %1173 = vmatprep.mubr.msk.f32.mxu1 (!%p146_p2), %vm1274_vm1, %v1273_v1  ;;  %1176 = vmatprep.subr.mxu0 (!%p146_p2), %v1273_v1  ;;  %v392_v19 = vshrl.u32 (!%p146_p2), %v391_v18, 7  ;;  %v272_v18 = vld [vmem:[%s1432_s2 + $0x20] sm:$0x3] (!%p146_p2)  ;;  %s1280_s15 = smov (!%p146_p2), 16   ;;  %vm496_vm6 = vcmask (!%p146_p2), 130048   ;;  %vm614_vm7 = vcmask (!%p146_p2), 261248  }
   0x9   : > { %1172 = vmatpush3.msra.mxu1 (!%p146_p2), %v270_v3  ;;  %1239 = vset.pattern.permute.xlu0 (!%p146_p2), %v1275_v9  ;;  %vm627_vm8 = vcmask (!%p146_p2), 261120   ;;  %vm1054_vm13 = vcmask (!%p146_p2), 31744  }
   0xa   : > { %1181 = vmatprep.subr.mxu1 (!%p146_p2), %v1273_v1  ;;  %v1344_v20 = vsub.s32 (!%p146_p2), 1, %v392_v19  ;;  %v1355_v36 = vsub.s32 (!%p146_p2), 0, %v392_v19 }
   0xc   : > { %v533_v19 = vrot.slane (!%p146_p2), %v272_v18, %v1344_v20 }
   0xd   : > { %s1435_s13 = smov (!%p171_p3, %s1121_s13), 1 }
   0xe   : > { %s1319_s16 = sshll.u32 %s1435_s13, 3 }
   0xf   : > { %s174_s19 = scalar_lea.vmem %s1430_s0, %s1319_s16  ;;  %s178_s30 = scalar_lea.vmem %s1431_s1, %s1319_s16 }
  0x10   : > { %v183_v2 = vld [vmem:[%s174_s19] sm:$0xff]  ;;  %s182_s29 = scalar_lea.vmem %s1433_s3, %s1319_s16 }
  0x11   : > { %1169 = vmatmul.mubr.msk.f32.vlgmr.msra.gmra.mrb[0].mxu0 %vm190_vm2, %v183_v2  ;;  %v1351_v24 = vld [vmem:[%s178_s30] sm:$0xff] }
  0x12   : > { %1178 = vmatprep.mubr.msk.f32.mxu0 %vm1274_vm1, %v1273_v1 }
  0xe4   : > { %v264_v5 = vpop.f32.mrb[0].mxu0 }
  0xe5   : > { %v265_v6 = vadd.f32 %v1129_v4, %v264_v5  ;;  %v1170_v7 = vpop.f32.mrb[1].mxu0 }
  0xe7   : > { %1243 = vtanh.f32 %v265_v6 }
  0xf1   : > { %v1244_v8 = vpop.eup %1243 }
  0xf2   : > { %1174 = vmatmul.mubr.msk.f32.vlgmr.msra.gmra.mrb[0].mxu1 %vm277_vm3, %v1244_v8 }
  0xf3   : > { %1183 = vmatprep.mubr.msk.f32.mxu1 %vm1274_vm1, %v1273_v1 }
 0x1c5   : > { %v347_v11 = vpop.f32.mrb[0].mxu1 }
 0x1c6   : > { %v348_v12 = vadd.f32 %v1132_v10, %v347_v11  ;;  %v1175_v13 = vpop.f32.mrb[1].mxu1  ;;  %v617_v11 = vld [vmem:[%s1432_s2 + $0x28] sm:$0xff] }
 0x1c8   : > { %352 = vrot.lane.b32.xlu0 %v348_v12, %s1276_s26  ;;  %1177 = vmatpush3.msra.mxu0 %v348_v12 }
 0x1cc   : > { %499 = vperm.xlu0 %1239, %v348_v12  }
 0x1d0   : > { %534 = vrot.lane.b32.xlu0 %v348_v12, %s1277_s27 }
 0x1d1   : > { %1241 = vset.pattern.permute.xlu0 %v1278_v14 }
 0x23a   : > { %v353_v15 = vpop.permute.xlu0 %352 }
 0x23b   : > { %355 = vxpose.xlu1.b32.start.end [1/1] (short) (narrow) %v353_v15, 8  ;;  %v619_v15 = vld [vmem:[%s1432_s2 + $0x38] sm:$0xff] }
 0x24b   : > { %v500_v16 = vpop.permute.xlu0 %499 }
 0x24f   : > { %v535_v17 = vpop.permute.xlu0 %534 }
 0x250   : > { %1182 = vmatpush3.msra.mxu1 %v535_v17 }
 0x251   : > { %1197 = vmatprep.subr.mxu1 %v1273_v1 }
 0x259   : > { %1240 = vset.pattern.permute.xlu1 %v1278_v14  ;;  %v1279_v14 = vmov 0.0|0.0  }
 0x25a   : > { %388 = vperm.xlu1 %1240, %v348_v12   ;;  %v618_v12 = vld [vmem:[%s1432_s2 + $0x30] sm:$0xff]  ;;  %1214 = vmatprep.subr.bf16.mxu0 %v1279_v14 }
 0x25b   : > { %v1215_v13 = vpack.c.bf16 %v618_v12, %v617_v11 }
 0x2bb   : > { %v371_v21 = vpop.trf.xlu1 }
 0x2bc   : > { %v505_v22 = vrot.slane %v371_v21, %v1344_v20  ;;  %v394_v38 = vrot.slane %v371_v21, %v1355_v36 }
 0x2be   : > { %v506_v23 = vadd.f32 %v505_v22, %v500_v16  ;;  %v620_v16 = vld [vmem:[%s1432_s2 + $0x40] sm:$0xff] }
 0x2bf   : > { %v1218_v17 = vpack.c.bf16 %v620_v16, %v619_v15 }
 0x2c0   : > { %vm507_vm4 = vcmp.gt.f32.partialorder %v506_v23, 0.0  ;;  %v508_v25 = vmul.f32 0.2, %v506_v23 }
 0x2c2   : > { %v509_v26 = vsel %vm507_vm4, %v506_v23, %v508_v25  ;;  %v422_v25 = vrot.slane %v272_v18, %v1355_v36 }
 0x2c3   : > { %v510_v27 = vadd.f32 %v509_v26, %v1351_v24 }
 0x2c5   : > { %v511_v28 = vsel %vm277_vm3, %v510_v27, -inf }
 0x2c6   : > { %v512_v29 = vrot.slane %v511_v28, 4 }
 0x2c8   : > { %v513_v30 = vmax.f32 %v511_v28, %v512_v29 }
 0x2ca   : > { %v514_v31 = vrot.slane %v513_v30, 2 }
 0x2cc   : > { %v515_v32 = vmax.f32 %v513_v30, %v514_v31  ;;  %v1136_v31 = vld [vmem:[%s1432_s2 + $0x48] ss:$0 sm:$0xff] }
 0x2ce   : > { %v516_v33 = vrot.slane %v515_v32, 1 }
 0x2d0   : > { %v517_v34 = vmax.f32 %v515_v32, %v516_v33 }
 0x2d2   : > { %v518_v35 = vsub.f32 %v510_v27, %v517_v34 }
 0x2d4   : > { %v519_v37 = vmul.f32 1.442695, %v518_v35 }
 0x2d6   : > { %1245 = vpow2.f32 %v519_v37 }
 0x2d9   : > { %v389_v39 = vpop.permute.xlu1 %388 }
 0x2da   : > { %v395_v40 = vadd.f32 %v394_v38, %v389_v39 }
 0x2dc   : > { %vm396_vm5 = vcmp.gt.f32.partialorder %v395_v40, 0.0  ;;  %v397_v41 = vmul.f32 0.2, %v395_v40 }
 0x2de   : > { %v398_v42 = vsel %vm396_vm5, %v395_v40, %v397_v41 }
 0x2df   : > { %v399_v43 = vadd.f32 %v398_v42, %v1351_v24 }
 0x2e0   : > { %v1246_v44 = vpop.eup %1245 }
 0x2e1   : > { %v521_v45 = vsel %vm277_vm3, %v1246_v44, 0.0  ;;  %v400_v46 = vsel %vm277_vm3, %v399_v43, -inf }
 0x2e2   : > { %v522_v47 = vrot.slane %v521_v45, 4  ;;  %v401_v48 = vrot.slane %v400_v46, 4 }
 0x2e4   : > { %v523_v49 = vadd.f32 %v522_v47, %v521_v45  ;;  %v402_v50 = vmax.f32 %v400_v46, %v401_v48 }
 0x2e6   : > { %v524_v51 = vrot.slane %v523_v49, 2  ;;  %v403_v52 = vrot.slane %v402_v50, 2 }
 0x2e8   : > { %v404_v53 = vmax.f32 %v402_v50, %v403_v52  ;;  %v525_v54 = vadd.f32 %v524_v51, %v523_v49 }
 0x2ea   : > { %v405_v55 = vrot.slane %v404_v53, 1  ;;  %v526_v56 = vrot.slane %v525_v54, 1 }
 0x2ec   : > { %v406_v57 = vmax.f32 %v404_v53, %v405_v55  ;;  %v527_v58 = vadd.f32 %v526_v56, %v525_v54 }
 0x2ee   : > { %v407_v59 = vsub.f32 %v399_v43, %v406_v57  ;;  %1247 = vrcp.f32 %v527_v58 }
 0x2f0   : > { %v408_v60 = vmul.f32 1.442695, %v407_v59 }
 0x2f2   : > { %1249 = vpow2.f32 %v408_v60 }
 0x2f8   : > { %v1248_v61 = vpop.eup %1247 }
 0x2f9   : > { %v529_v62 = vmul.f32 %v1248_v61, %v1246_v44 }
 0x2fb   : > { %1184 = vmatmul.mubr.msk.f32.vlgmr.msra.gmra.mrb[2].mxu1 %vm277_vm3, %v529_v62 }
 0x2fc   : > { %v1250_v63 = vpop.eup %1249  ;;  %1199 = vmatprep.mubr.msk.f32.mxu1 %vm1274_vm1, %v1273_v1 }
 0x2fd   : > { %v410_v0 = vsel %vm277_vm3, %v1250_v63, 0.0 }
 0x2fe   : > { %v411_v2 = vrot.slane %v410_v0, 4 }
 0x300   : > { %v412_v3 = vadd.f32 %v411_v2, %v410_v0 }
 0x302   : > { %v413_v4 = vrot.slane %v412_v3, 2 }
 0x304   : > { %v414_v5 = vadd.f32 %v413_v4, %v412_v3 }
 0x306   : > { %v415_v6 = vrot.slane %v414_v5, 1 }
 0x308   : > { %v416_v7 = vadd.f32 %v415_v6, %v414_v5 }
 0x30a   : > { %1251 = vrcp.f32 %v416_v7 }
 0x314   : > { %v1252_v8 = vpop.eup %1251 }
 0x315   : > { %v418_v10 = vmul.f32 %v1252_v8, %v1250_v63 }
 0x317   : > { %1179 = vmatmul.mubr.msk.f32.vlgmr.msra.gmra.mrb[2].mxu0 %vm277_vm3, %v418_v10 }
 0x318   : > { %1194 = vmatprep.mubr.msk.f32.mxu0 %vm1274_vm1, %v1273_v1  ;;  %1216 = vmatpush3.bf16.msra.mxu0 %v1215_v13 }
 0x319   : > { %1217 = vmatprep.subr.bf16.mxu0 %v1279_v14 }
 0x31c   : > { %1219 = vmatpush3.bf16.msra.mxu0 %v1218_v17 }
 0x31d   : > { %1220 = vmatprep.subr.bf16.mxu0 %v1279_v14 }
 0x3ce   : > { %v606_v21 = vpop.f32.mrb[2].mxu1 }
 0x3cf   : > { %v607_v22 = vadd.f32 %v606_v21, %v533_v19  ;;  %v1185_v23 = vpop.f32.mrb[3].mxu1 }
 0x3d1   : > { %611 = vrot.lane.b32.xlu0 %v607_v22, %s1280_s15 }
 0x3ea   : > { %v492_v26 = vpop.f32.mrb[2].mxu0 }
 0x3eb   : > { %v493_v27 = vadd.f32 %v492_v26, %v422_v25  ;;  %v1180_v28 = vpop.f32.mrb[3].mxu0 }
 0x3ec   : > { %v975_v28 = vld [vmem:[%s1432_s2 + $0x60] sm:$0xff] }
 0x3ed   : > { %497 = vst.msk [vmem:[#allocation2] sm:$0xff] %vm496_vm6, %v493_v27  ;;  %v974_v27 = vld [vmem:[%s1432_s2 + $0x58] sm:$0xff] }
 0x443   : > { %v612_v29 = vpop.permute.xlu0 %611 }
 0x444   : > { %615 = vst.msk [vmem:[#allocation2] sm:$0xff] %vm614_vm7, %v612_v29  ;;  %v1221_v29 = vpack.c.bf16 %v975_v28, %v974_v27 }
 0x44b   : > { %v616_v30 = vld [vmem:[#allocation2] sm:$0xff] }
 0x44c   : > { %1195 = vmatmul.mubr.msk.f32.vlgmr.msra.gmra.mrb[4].mxu0 %vm627_vm8, %v616_v30  ;;  %v622_v30 = vld [vmem:[%s1432_s2 + $0x50] sm:$0x3] }
 0x44d   : > { %1211 = vmatprep.mubr.msk.f32.mxu0 %vm1274_vm1, %v1273_v1  ;;  %1222 = vmatpush3.bf16.msra.mxu0 %v1221_v29 }
 0x51f   : > { %v697_v32 = vpop.f32.mrb[4].mxu0 }
 0x520   : > { %v698_v33 = vadd.f32 %v1136_v31, %v697_v32  ;;  %v1196_v34 = vpop.f32.mrb[5].mxu0  ;;  %v772_v31 = vrot.slane %v622_v30, %v1355_v36 }
 0x521   : > { %v887_v34 = vrot.slane %v622_v30, %v1344_v20 }
 0x522   : > { %702 = vrot.lane.b32.xlu0 %v698_v33, %s1276_s26  ;;  %1198 = vmatpush3.msra.mxu1 %v698_v33 }
 0x523   : > { %1202 = vmatprep.subr.mxu1 %v1273_v1 }
 0x526   : > { %738 = vperm.xlu0 %1241, %v698_v33  }
 0x52a   : > { %1242 = vset.pattern.permute.xlu0 %v1275_v9 }
 0x52b   : > { %853 = vperm.xlu0 %1242, %v698_v33  }
 0x52f   : > { %888 = vrot.lane.b32.xlu0 %v698_v33, %s1277_s27 }
 0x594   : > { %v703_v35 = vpop.permute.xlu0 %702 }
 0x595   : > { %705 = vxpose.xlu1.b32.start.end [1/1] (short) (narrow) %v703_v35, 8 }
 0x5a5   : > { %v739_v37 = vpop.permute.xlu0 %738 }
 0x5aa   : > { %v854_v41 = vpop.permute.xlu0 %853 }
 0x5ae   : > { %v889_v25 = vpop.permute.xlu0 %888 }
 0x615   : > { %v721_v38 = vpop.trf.xlu1 }
 0x616   : > { %v744_v39 = vrot.slane %v721_v38, %v1355_v36  ;;  %v859_v40 = vrot.slane %v721_v38, %v1344_v20 }
 0x618   : > { %v745_v42 = vadd.f32 %v744_v39, %v739_v37  ;;  %v860_v43 = vadd.f32 %v859_v40, %v854_v41 }
 0x61a   : > { %vm746_vm9 = vcmp.gt.f32.partialorder %v745_v42, 0.0  ;;  %v747_v44 = vmul.f32 0.2, %v745_v42  ;;  %vm861_vm10 = vcmp.gt.f32.partialorder %v860_v43, 0.0  ;;  %v862_v45 = vmul.f32 0.2, %v860_v43 }
 0x61c   : > { %v748_v46 = vsel %vm746_vm9, %v745_v42, %v747_v44  ;;  %v863_v9 = vsel %vm861_vm10, %v860_v43, %v862_v45 }
 0x61d   : > { %v749_v47 = vadd.f32 %v748_v46, %v1351_v24  ;;  %v864_v48 = vadd.f32 %v863_v9, %v1351_v24 }
 0x61f   : > { %v750_v49 = vsel %vm277_vm3, %v749_v47, -inf  ;;  %v865_v50 = vsel %vm277_vm3, %v864_v48, -inf }
 0x620   : > { %v751_v51 = vrot.slane %v750_v49, 4  ;;  %v866_v52 = vrot.slane %v865_v50, 4 }
 0x622   : > { %v752_v53 = vmax.f32 %v750_v49, %v751_v51  ;;  %v867_v54 = vmax.f32 %v865_v50, %v866_v52  ;;  %v1142_v49 = vld [vmem:[%s1432_s2 + $0x68] ss:$0 sm:$0xff] }
 0x624   : > { %v753_v55 = vrot.slane %v752_v53, 2  ;;  %v868_v56 = vrot.slane %v867_v54, 2 }
 0x626   : > { %v754_v57 = vmax.f32 %v752_v53, %v753_v55  ;;  %v869_v58 = vmax.f32 %v867_v54, %v868_v56 }
 0x628   : > { %v755_v59 = vrot.slane %v754_v57, 1  ;;  %v870_v60 = vrot.slane %v869_v58, 1 }
 0x62a   : > { %v756_v61 = vmax.f32 %v754_v57, %v755_v59  ;;  %v871_v62 = vmax.f32 %v869_v58, %v870_v60 }
 0x62c   : > { %v757_v63 = vsub.f32 %v749_v47, %v756_v61  ;;  %v872_v0 = vsub.f32 %v864_v48, %v871_v62 }
 0x62e   : > { %v758_v2 = vmul.f32 1.442695, %v757_v63  ;;  %v873_v24 = vmul.f32 1.442695, %v872_v0 }
 0x630   : > { %1253 = vpow2.f32 %v758_v2 }
 0x631   : > { %1255 = vpow2.f32 %v873_v24 }
 0x63a   : > { %v1254_v3 = vpop.eup %1253 }
 0x63b   : > { %v1256_v4 = vpop.eup %1255  ;;  %v760_v5 = vsel %vm277_vm3, %v1254_v3, 0.0 }
 0x63c   : > { %v761_v6 = vrot.slane %v760_v5, 4  ;;  %v875_v7 = vsel %vm277_vm3, %v1256_v4, 0.0 }
 0x63d   : > { %v876_v8 = vrot.slane %v875_v7, 4 }
 0x63e   : > { %v762_v10 = vadd.f32 %v761_v6, %v760_v5 }
 0x63f   : > { %v877_v11 = vadd.f32 %v876_v8, %v875_v7 }
 0x640   : > { %v763_v12 = vrot.slane %v762_v10, 2 }
 0x641   : > { %v878_v13 = vrot.slane %v877_v11, 2 }
 0x642   : > { %v764_v14 = vadd.f32 %v763_v12, %v762_v10 }
 0x643   : > { %v879_v15 = vadd.f32 %v878_v13, %v877_v11 }
 0x644   : > { %v765_v16 = vrot.slane %v764_v14, 1 }
 0x645   : > { %v880_v17 = vrot.slane %v879_v15, 1 }
 0x646   : > { %v766_v18 = vadd.f32 %v765_v16, %v764_v14 }
 0x647   : > { %v881_v19 = vadd.f32 %v880_v17, %v879_v15 }
 0x648   : > { %1257 = vrcp.f32 %v766_v18 }
 0x649   : > { %1259 = vrcp.f32 %v881_v19 }
 0x652   : > { %v1258_v21 = vpop.eup %1257 }
 0x653   : > { %v768_v22 = vmul.f32 %v1258_v21, %v1254_v3  ;;  %v1260_v23 = vpop.eup %1259 }
 0x654   : > { %v883_v26 = vmul.f32 %v1260_v23, %v1256_v4 }
 0x655   : > { %1200 = vmatmul.mubr.msk.f32.vlgmr.msra.gmra.mrb[4].mxu1 %vm277_vm3, %v768_v22 }
 0x656   : > { %1203 = vmatpush3.msra.mxu1 %v889_v25  ;;  %1204 = vmatprep.mubr.msk.f32.mxu1 %vm1274_vm1, %v1273_v1 }
 0x659   : > { %1205 = vmatmul.mubr.msk.f32.vlgmr.msra.gmra.mrb[6].mxu1 %vm277_vm3, %v883_v26 }
 0x728   : > { %v842_v1 = vpop.f32.mrb[4].mxu1 }
 0x729   : > { %v843_v32 = vadd.f32 %v842_v1, %v772_v31  ;;  %v1201_v33 = vpop.f32.mrb[5].mxu1 }
 0x72b   : > { %v847_v35 = vmin.f32 %v843_v32, 0.0  ;;  %vm846_vm11 = vcmp.gt.f32.partialorder %v843_v32, 0.0 }
 0x72c   : > { %v960_v37 = vpop.f32.mrb[6].mxu1 }
 0x72d   : > { %v848_v38 = vmul.f32 1.442695, %v847_v35  ;;  %v961_v39 = vadd.f32 %v960_v37, %v887_v34  ;;  %v1206_v40 = vpop.f32.mrb[7].mxu1 }
 0x72f   : > { %1261 = vpow2.f32 %v848_v38  ;;  %v965_v41 = vmin.f32 %v961_v39, 0.0  ;;  %vm964_vm12 = vcmp.gt.f32.partialorder %v961_v39, 0.0 }
 0x731   : > { %v966_v42 = vmul.f32 1.442695, %v965_v41 }
 0x733   : > { %1263 = vpow2.f32 %v966_v42 }
 0x739   : > { %v1262_v43 = vpop.eup %1261 }
 0x73a   : > { %v1139_v44 = vadd.f32 -1.0, %v1262_v43 }
 0x73c   : > { %v851_v36 = vsel %vm846_vm11, %v843_v32, %v1139_v44 }
 0x73d   : > { %v1264_v45 = vpop.eup %1263 }
 0x73e   : > { %v1141_v46 = vadd.f32 -1.0, %v1264_v45 }
 0x740   : > { %v969_v9 = vsel %vm964_vm12, %v961_v39, %v1141_v46 }
 0x741   : > { %v970_v47 = vadd.f32 %v969_v9, %v851_v36 }
 0x743   : > { %v971_v20 = vmul.f32 0.5, %v970_v47 }
 0x745   : > { %972 = vst.msk [vmem:[#allocation2] sm:$0xff] %vm496_vm6, %v971_v20 }
 0x74c   : > { %v973_v48 = vld [vmem:[#allocation2] sm:$0xff] }
 0x74d   : > { %1212 = vmatmul.mubr.msk.f32.vlgmr.msra.gmra.mrb[6].mxu0 %vm496_vm6, %v973_v48 }
 0x820   : > { %v1050_v50 = vpop.f32.mrb[6].mxu0 }
 0x821   : > { %v1051_v51 = vadd.f32 %v1142_v49, %v1050_v50  ;;  %v1213_v52 = vpop.f32.mrb[7].mxu0 }
 0x823   : > { %1055 = vst.msk [vmem:[%s182_s29] sm:$0xff] %vm1054_vm13, %v1051_v51 }
 0x824 PF: > { %s13_s12 = sadd.s32 1, %s1271_s12  }
 0x825   : > { %p10_p4 = scmp.ge.s32.totalorder %s13_s12, 4  }
 0x827   :  { %12 = sbr.rel (!%p10_p4) target bundleno = 1 (0x1), region = 65 }

</bundles_post_ra>
